<compile_context>
chip_gen: v7x
topology: tpu7x:2x2x1
jax: 0.10.0
libtpu: 0.0.40
codegen_flags: <defaults>
</compile_context>

<pallas_src>
import jax
import jax.numpy as jnp
from jax import lax
from jax.experimental import pallas as pl
from jax.experimental.pallas import tpu as pltpu

EMP = 0.1
COS_EPS = 1e-8        # torch cosine_similarity default eps (per-norm clamp)
ZERO_VEC = 9e-15


def _sim_kernel_full(x_ref, w_ref, o_ref):
    # x_ref: (bb, N, F); w_ref: (N, F); o_ref: (bb, N, N)
    y = x_ref[...] * w_ref[...]                                    # VPU
    dots = jnp.einsum("bif,bjf->bij", y, y,
                      preferred_element_type=jnp.float32)          # MXU, NT
    sq = jnp.sum(y * y, axis=-1, keepdims=True)                    # (bb, N, 1)
    inv = lax.rsqrt(jnp.maximum(sq, COS_EPS * COS_EPS))            # 1/max(||y||, eps), EUP
    cos = dots * inv * jnp.swapaxes(inv, 1, 2)
    o_ref[...] = jnp.where(cos > EMP, cos, ZERO_VEC)


def _sim_kernel_tiled(xi_ref, xj_ref, wi_ref, wj_ref, o_ref):
    # xi_ref: (bb, ti, F); xj_ref: (bb, tj, F); o_ref: (bb, ti, tj)
    yi = xi_ref[...] * wi_ref[...]
    yj = xj_ref[...] * wj_ref[...]
    dots = jnp.einsum("bif,bjf->bij", yi, yj,
                      preferred_element_type=jnp.float32)
    inv_i = lax.rsqrt(jnp.maximum(jnp.sum(yi * yi, axis=-1, keepdims=True),
                                  COS_EPS * COS_EPS))              # (bb, ti, 1)
    inv_j = lax.rsqrt(jnp.maximum(jnp.sum(yj * yj, axis=-1, keepdims=True),
                                  COS_EPS * COS_EPS))              # (bb, tj, 1)
    cos = dots * inv_i * jnp.swapaxes(inv_j, 1, 2)
    o_ref[...] = jnp.where(cos > EMP, cos, ZERO_VEC)


def _vmem_budget_bytes():
    """Generation-aware scoped-VMEM budget (~70% of physical, capped)."""
    cap = None
    try:
        cap = getattr(pltpu.get_tpu_info(), "vmem_capacity_bytes", None)
    except Exception:
        cap = None
    if not cap:
        cap = 64 * 1024 * 1024           # conservative fallback = v7x physical VMEM
    return min(int(cap * 0.7), 96 * 1024 * 1024)


def _choose_block_b(B, in_rows, F, ti, tj, vmem_budget):
    """Batch elements per grid step.

    As large as the VMEM budget allows, capped at ~4 MiB/step (enough to
    amortize the ~0.35us per-step pipeline overhead) and capped so that the
    batch-block axis has >= 2 steps whenever B >= 2 (v7x has 2 TensorCores).
    Counts double-buffered in/out blocks plus kernel intermediates."""
    per_b = 4 * (3 * in_rows * F + 4 * ti * tj)      # f32 bytes per batch elem
    fixed = 4 * 2 * in_rows * F                      # resident weight block(s)
    target = 4 * 1024 * 1024
    bb_vmem = max(1, (vmem_budget - fixed) // per_b)
    bb_target = max(1, target // per_b)
    bb = max(1, min(B, bb_vmem, bb_target))
    bb = max(1, min(bb, -(-B // 2)))                 # >= 2 grid steps when B >= 2
    return int(bb)


def sim_metric_block(x, w):
    """x: (B, N, ...) array; w: (1, N, F) parameter.  Returns (B, N, N) f32."""
    B, N = x.shape[0], x.shape[1]
    x_flat = x.reshape(B, N, -1).astype(jnp.float32)     # glue: view(B, N, -1)
    F = x_flat.shape[-1]
    w2d = w.reshape(N, F).astype(jnp.float32)

    vmem_budget = _vmem_budget_bytes()

    # ---- Large-N path: lane-dense 128/256-wide output tiles over (b, i, j).
    if N > 256 and N % 128 == 0:
        tile = 256 if N % 256 == 0 else 128
        ti = tj = tile
        bb = _choose_block_b(B, ti + tj, F, ti, tj, vmem_budget)
        return pl.pallas_call(
            _sim_kernel_tiled,
            out_shape=jax.ShapeDtypeStruct((B, N, N), jnp.float32),
            grid_spec=pltpu.PrefetchScalarGridSpec(
                num_scalar_prefetch=0,
                grid=(pl.cdiv(B, bb), N // ti, N // tj),
                in_specs=[
                    pl.BlockSpec((bb, ti, F), lambda b, i, j: (b, i, 0)),
                    pl.BlockSpec((bb, tj, F), lambda b, i, j: (b, j, 0)),
                    pl.BlockSpec((ti, F), lambda b, i, j: (i, 0)),
                    pl.BlockSpec((tj, F), lambda b, i, j: (j, 0)),
                ],
                out_specs=pl.BlockSpec((bb, ti, tj), lambda b, i, j: (b, i, j)),
            ),
            compiler_params=pltpu.CompilerParams(
                dimension_semantics=("parallel", "parallel", "parallel"),
                vmem_limit_bytes=vmem_budget),
        )(x_flat, x_flat, w2d, w2d)

    # ---- Small / moderate N: full NxN per batch slab, one grid axis over batch.
    bb = _choose_block_b(B, N, F, N, N, vmem_budget)
    return pl.pallas_call(
        _sim_kernel_full,
        out_shape=jax.ShapeDtypeStruct((B, N, N), jnp.float32),
        grid_spec=pltpu.PrefetchScalarGridSpec(
            num_scalar_prefetch=0,
            grid=(pl.cdiv(B, bb),),
            in_specs=[
                pl.BlockSpec((bb, N, F), lambda b: (b, 0, 0)),
                pl.BlockSpec((N, F), lambda b: (0, 0)),
            ],
            out_specs=pl.BlockSpec((bb, N, N), lambda b: (b, 0, 0)),
        ),
        compiler_params=pltpu.CompilerParams(
            dimension_semantics=("parallel",),
            vmem_limit_bytes=vmem_budget),
    )(x_flat, w2d)


def sim_metric_ref(x, w):
    """Pure-JAX reference mirroring the PyTorch forward."""
    B, N = x.shape[0], x.shape[1]
    y = x.reshape(B, N, -1).astype(jnp.float32) * w.reshape(1, N, -1).astype(jnp.float32)
    norm = jnp.maximum(jnp.sqrt(jnp.sum(y * y, axis=-1, keepdims=True)), COS_EPS)
    dots = jnp.einsum("bif,bjf->bij", y, y)
    cos = dots / (norm * jnp.swapaxes(norm, 1, 2))
    return jnp.where(cos > EMP, cos, ZERO_VEC)


if __name__ == "__main__":
    key = jax.random.PRNGKey(0)
    k_x, k_w = jax.random.split(key)

    # Small shapes consistent with the module: batch=2, num_nodes=8,
    # trailing spatial (4, 8) flattened to num_features=32.
    B, N, H, W = 2, 8, 4, 8
    num_features = H * W

    x = jax.random.normal(k_x, (B, N, H, W), dtype=jnp.float32)
    w = jax.random.normal(k_w, (1, N, num_features), dtype=jnp.float32)  # nn.Parameter(randn)

    out = jax.block_until_ready(sim_metric_block(x, w))

    ref = sim_metric_ref(x, w)
    assert out.shape == (B, N, N)
    assert jnp.allclose(out, ref, atol=1e-5, rtol=1e-5), "mismatch vs reference"

    print("KERNEL_OK")
</pallas_src>

<mosaic_0001>
module attributes {stable_mosaic.version = 11 : i64} {
  func.func @_sim_kernel_full(%arg0: i32, %arg1: memref<1x8x32xf32, #tpu.memory_space<vmem>>, %arg2: memref<8x32xf32, #tpu.memory_space<vmem>>, %arg3: memref<1x8x8xf32, #tpu.memory_space<vmem>>) attributes {dimension_semantics = [#tpu.dimension_semantics<parallel>], iteration_bounds = array<i64: 2>, scalar_prefetch = 0 : i64, scratch_operands = 0 : i64, tpu.core_type = #tpu.core_type<tc>, window_params = [{transform_indices = @transform_0, window_bounds = array<i64: 1, 8, 32>}, {pipeline_mode = #tpu.pipeline_mode<synchronous>, transform_indices = @transform_1, window_bounds = array<i64: 8, 32>}, {transform_indices = @transform_2, window_bounds = array<i64: 1, 8, 8>}]} {
    %c0 = arith.constant 0 : index
    %c0_0 = arith.constant 0 : index
    %c0_1 = arith.constant 0 : index
    %0 = vector.load %arg1[%c0, %c0_0, %c0_1] : memref<1x8x32xf32, #tpu.memory_space<vmem>>, vector<1x8x32xf32>
    %c0_2 = arith.constant 0 : index
    %c0_3 = arith.constant 0 : index
    %1 = vector.load %arg2[%c0_2, %c0_3] : memref<8x32xf32, #tpu.memory_space<vmem>>, vector<8x32xf32>
    %2 = vector.shape_cast %1 : vector<8x32xf32> to vector<1x8x32xf32>
    %3 = arith.mulf %0, %2 : vector<1x8x32xf32>
    "tpu.trace_start"() <{level = 10 : i32, message = "bif,bjf->bij"}> : () -> ()
    %cst = arith.constant dense<0.000000e+00> : vector<1x8x8xf32>
    %4 = tpu.matmul %3, %3, %cst {dimension_numbers = #tpu.dot_dimension_numbers<[2], [2], [1], [1], [0, 0, 0, 1, 1, 1], [0], [0]>} : vector<1x8x32xf32>, vector<1x8x32xf32>, vector<1x8x8xf32> -> vector<1x8x8xf32>
    "tpu.trace_stop"() : () -> ()
    %5 = arith.mulf %3, %3 : vector<1x8x32xf32>
    %cst_4 = arith.constant dense<0.000000e+00> : vector<1x8xf32>
    %6 = vector.multi_reduction <add>, %5, %cst_4 [2] : vector<1x8x32xf32> to vector<1x8xf32>
    %7 = vector.shape_cast %6 : vector<1x8xf32> to vector<1x8x1xf32>
    %cst_5 = arith.constant 1.000000e-16 : f32
    %8 = vector.broadcast %cst_5 : f32 to vector<1x8x1xf32>
    %9 = arith.maximumf %7, %8 : vector<1x8x1xf32>
    %10 = math.rsqrt %9 : vector<1x8x1xf32>
    %11 = vector.broadcast %10 : vector<1x8x1xf32> to vector<1x8x8xf32>
    %12 = arith.mulf %4, %11 : vector<1x8x8xf32>
    %13 = tpu.transpose %10, [0, 2, 1] : vector<1x8x1xf32> -> vector<1x1x8xf32>
    %14 = vector.broadcast %13 : vector<1x1x8xf32> to vector<1x8x8xf32>
    %15 = arith.mulf %12, %14 : vector<1x8x8xf32>
    %cst_6 = arith.constant 1.000000e-01 : f32
    %16 = vector.broadcast %cst_6 : f32 to vector<1x8x8xf32>
    %17 = arith.cmpf ogt, %15, %16 : vector<1x8x8xf32>
    %cst_7 = arith.constant 9.000000e-15 : f32
    %18 = vector.broadcast %cst_7 : f32 to vector<1x8x8xf32>
    %19 = arith.select %17, %15, %18 : vector<1x8x8xi1>, vector<1x8x8xf32>
    %c0_8 = arith.constant 0 : index
    %c0_9 = arith.constant 0 : index
    %c0_10 = arith.constant 0 : index
    %20 = vector.load %arg3[%c0_8, %c0_9, %c0_10] : memref<1x8x8xf32, #tpu.memory_space<vmem>>, vector<1x8x8xf32>
    tpu.vector_store %arg3[%c0_8, %c0_9, %c0_10], %19 {strides = array<i32>} : memref<1x8x8xf32, #tpu.memory_space<vmem>>, vector<1x8x8xf32>,
    return
  }
  func.func @transform_0(%arg0: i32) -> (i32, i32, i32) {
    %c0_i32 = arith.constant 0 : i32
    %c0_i32_0 = arith.constant 0 : i32
    %c0_i32_1 = arith.constant 0 : i32
    return %arg0, %c0_i32, %c0_i32_0 : i32, i32, i32
  }
  func.func @transform_1(%arg0: i32) -> (i32, i32) {
    %c0_i32 = arith.constant 0 : i32
    %c0_i32_0 = arith.constant 0 : i32
    %c0_i32_1 = arith.constant 0 : i32
    return %c0_i32, %c0_i32_0 : i32, i32
  }
  func.func @transform_2(%arg0: i32) -> (i32, i32, i32) {
    %c0_i32 = arith.constant 0 : i32
    %c0_i32_0 = arith.constant 0 : i32
    %c0_i32_1 = arith.constant 0 : i32
    return %arg0, %c0_i32, %c0_i32_0 : i32, i32, i32
  }
}

</mosaic_0001>

<bundles_post_ra>
// kernel: tpu_custom_call.1
= control target key start
LH: loop header
LB: loop body
LE: loop exit
PB: predicated region body
PF: predicated region fallthrough
CT: control target
= control target key end

     0   :  { %7 = vsyncpa [#allocation3], 0  ;;  %s830_s0 = inlined_call_operand.hbm [shape: f32[2,8,32], index: 0, kind: input, shape index: {}]   ;;  %s831_s1 = inlined_call_operand.hbm [shape: f32[8,32], index: 1, kind: input, shape index: {}]   ;;  %s832_s2 = inlined_call_operand.hbm [shape: f32[2,8,8], index: 2, kind: output, shape index: {}]  }
   0x1   :  { %9 = vsyncpa [#allocation3 + $0x1], 0 }
   0x2   :  { %10 = vsyncpa [#allocation6], 0 }
   0x3   :  { %11 = vsyncpa [#allocation4], 0 }
   0x4   :  { %13 = vsyncpa [#allocation4 + $0x1], 0  ;;  %s625_s9 = smov 0   ;;  %s627_s10 = smov 0  }
   0x5   :  { %s629_s11 = smov 0   ;;  %s631_s12 = smov 0  }
   0x6 LB: > { %s646_s13 = sadd.s32 4294967295, %s603_s12   ;;  %s391_s14 = sadd.s32 4294967294, %s603_s12   ;;  %s603_s12 = sphi %s631_s12, %s856_s12   ;;  %s599_s11 = sphi %s629_s11, %s855_s11   ;;  %s595_s10 = sphi %s627_s10, %s854_s10   ;;  %s591_s9 = sphi %s625_s9, %s853_s9  }
   0x7   : > { %p39_p0 = scmp.ne.s32.totalorder %s595_s10, %s591_s9  ;;  %p833_p1 = scmp.eq.s32.totalorder %s646_s13, 0 }
   0x8   : > { %p90_p3 = scmp.eq.s32.totalorder %s391_s14, 1  ;;  %p392_p5 = scmp.ge.s32.totalorder %s603_s12, 1 }
   0x9   : > { %p655_p4 = por %p833_p1, %p39_p0  ;;  %p97_p7 = scmp.lt.s32.totalorder %s603_s12, 3 }
   0xa   : > { %p660_p6 = por %p90_p3, %p39_p0  ;;  %s605_s18 = smov [#allocation5]  }
   0xb   : > { %s836_s15 = scalar_select %p655_p4, 1, 0 }
   0xc   : > { %s837_s16 = scalar_select %p660_p6, 1, 0 }
   0xd   : > { %p665_p8 = pnand %p392_p5, %p97_p7  ;;  %s110_s19 = sshll.u32 %s605_s18, 4  ;;  %s111_s19 = int_to_ptr.vmem [resolvable:$true] %s110_s19 }
   0xe   : > { %s673_s20 = sadd.s32 1, %s603_s12   ;;  %s26_s24 = sadd.s32 1, %s599_s11 }
   0xf   : > { %s838_s17 = scalar_select %p665_p8, 1, 0 }
  0x10   : > { %p422_p10 = pneg %p665_p8  ;;  %s23_s22 = ssub.s32 %s603_s12, %s673_s20 }
  0x11   : > { %p683_p12 = scmp.eq.s32.totalorder %s23_s22, 0  ;;  %s475_s27 = scalar_lea.hbm %s831_s1, 128 }
  0x12   : > { %p677_p11 = pnand %p422_p10, %p833_p1  ;;  %p476_p0 = scmp.ne.s32.totalorder %s831_s1, %s475_s27 }
  0x13   : > { %s840_s23 = scalar_select %p683_p12, 1, 0 }
  0x14   : > { %p477_p3 = pneg %p677_p11  ;;  %p482_p10 = scmp.lt.u32.totalorder %s475_s27, %s831_s1 }
  0x16   : > { %p478_p5 = pnand %p477_p3, %p476_p0 }
  0x18   : > { %p479_p7 = pneg %p478_p5 }
  0x1a   : > { %p484_p9 = pnand %p482_p10, %p479_p7 }
  0x1c   : > { %487 = shalt.err (!%p484_p9)
}
  0x1d   : > { %s488_s4 = scalar_lea.vmem %s111_s19, 128  ;;  %p496_p6 = scmp.lt.s32.totalorder %s111_s19, %s111_s19 }
  0x1e   : > { %p489_p1 = scmp.ne.s32.totalorder %s111_s19, %s488_s4  ;;  %p497_p4 = scmp.lt.s32.totalorder %s488_s4, %s488_s4 }
  0x20   : > { %p491_p2 = pnand %p489_p1, %p477_p3  ;;  %p498_p8 = por %p497_p4, %p496_p6 }
  0x22   : > { %p492_p13 = pneg %p491_p2 }
  0x24   : > { %p499_p12 = pnand %p498_p8, %p492_p13 }
  0x26   : > { %502 = shalt.err (!%p499_p12)
}
  0x27   : > { %425 = dma.hbm_to_vmem [thread:$0]  (!%p677_p11), %s831_s1, 128, %s111_s19, [#allocation6]  }
  0x28   : > { %p841_p1 = scmp.ne.s32.totalorder %s840_s23, 0  ;;  %p34_p2 = scmp.eq.s32.totalorder %s603_s12, 0 }
  0x29   : > { %p842_p4 = scmp.ne.s32.totalorder %s599_s11, %s595_s10  ;;  %p843_p6 = scmp.eq.s32.totalorder %s646_s13, 1 }
  0x2a   : > { %s709_s7 = scalar_select %p841_p1, %s599_s11, %s26_s24  }
  0x2b   : > { %p717_p8 = por %p843_p6, %p842_p4  ;;  %p435_p9 = scmp.lt.s32.totalorder %s603_s12, 2 }
  0x2c   : > { %s121_s14 = sand.u32 1, %s599_s11   ;;  %p845_p12 = pmov %p842_p4 }
  0x2d   : > { %s395_s18 = sshll.u32 %s121_s14, 3  ;;  %s396_s21 = sshll.u32 %s603_s12, 7 }
  0x2e   : > { %p35_p13 = por %p34_p2, %p845_p12  ;;  %s730_s19 = scalar_lea.hbm %s830_s0, %s396_s21 }
  0x2f   : > { %s125_s23 = scalar_lea.vmem [#allocation2], %s395_s18  ;;  %s122_s27 = scalar_lea.sflag [#allocation3], %s121_s14 }
  0x30   : > { %s132_s24 = sshll.u32 %s125_s23, 4  ;;  %p732_p11 = pnand %p435_p9, %p35_p13  ;;  %s736_s24 = int_to_ptr.vmem [resolvable:$true] %s132_s24 }
  0x31   : > { %s503_s28 = scalar_lea.hbm %s730_s19, 128  ;;  %s508_s3 = scalar_lea.hbm %s830_s0, 256 }
  0x32   : > { %p504_p0 = scmp.ne.s32.totalorder %s730_s19, %s503_s28  ;;  %p505_p3 = pneg %p732_p11 }
  0x33   : > { %p509_p10 = scmp.lt.u32.totalorder %s730_s19, %s830_s0  ;;  %p510_p1 = scmp.lt.u32.totalorder %s508_s3, %s503_s28 }
  0x34   : > { %p506_p5 = pnand %p505_p3, %p504_p0  ;;  %p512_p4 = scmp.lt.u32.totalorder %s503_s28, %s730_s19 }
  0x35   : > { %p511_p2 = por %p510_p1, %p509_p10 }
  0x36   : > { %p507_p7 = pneg %p506_p5 }
  0x37   : > { %p513_p6 = por %p512_p4, %p511_p2 }
  0x39   : > { %p514_p9 = pnand %p513_p6, %p507_p7 }
  0x3b   : > { %517 = shalt.err (!%p514_p9)
}
  0x3c   : > { %s518_s6 = scalar_lea.vmem %s736_s24, 128  ;;  %s606_s14 = smov [#allocation2]  }
  0x3d   : > { %p519_p12 = scmp.ne.s32.totalorder %s736_s24, %s518_s6  ;;  %s523_s18 = sshll.u32 %s606_s14, 4  ;;  %s524_s18 = int_to_ptr.vmem [resolvable:$false] %s523_s18 }
  0x3e   : > { %s525_s21 = scalar_lea.vmem %s524_s18, 256  ;;  %p526_p5 = scmp.lt.s32.totalorder %s736_s24, %s524_s18 }
  0x3f   : > { %p521_p13 = pnand %p519_p12, %p505_p3  ;;  %p527_p10 = scmp.lt.s32.totalorder %s525_s21, %s518_s6 }
  0x41   : > { %p522_p0 = pneg %p521_p13  ;;  %p528_p1 = por %p527_p10, %p526_p5 }
  0x43   : > { %p529_p2 = pnand %p528_p1, %p522_p0 }
  0x45   : > { %532 = shalt.err (!%p529_p2)
}
  0x46   : > { %429 = dma.hbm_to_vmem [thread:$0]  (!%p732_p11), %s730_s19, 128, %s736_s24, %s122_s27  }
  0x47   : > { %p847_p7 = scmp.ne.s32.totalorder %s838_s17, 0 }
  0x48   : > { %s766_s22 = sand.u32 (!%p847_p7), 1, %s595_s10   ;;  %p848_p3 = scmp.ne.s32.totalorder (!%p847_p7), %s836_s15, 0 }
  0x49   : > { %141 = sbr.rel (%p847_p7) target bundleno = 394 (0x18a), region = 28  ;;  %s398_s25 = sshll.u32 (!%p847_p7), %s766_s22, 3 }
  0x4a   : > { %s144_s23 = scalar_lea.sflag (!%p847_p7), [#allocation3], %s766_s22  ;;  %s147_s28 = scalar_lea.vmem (!%p847_p7), [#allocation2], %s398_s25 }
  0x50   : > { %578 = dma.done.wait (%p848_p3), %s144_s23, 128  }
  0x51   : > { %580 = vsyncadd (%p848_p3), %s144_s23, 4294967168  ;;  %p849_p11 = scmp.eq.s32.totalorder %s646_s13, 0 }
  0x53   : > { %582 = dma.done.wait (%p849_p11), [#allocation6], 128   ;;  %p850_p4 = pmov %p849_p11 }
  0x54   : > { %v607_v0 = vmov 0.0   ;;  %vm608_vm0 = vmmov 0   ;;  %v172_v1 = vld [vmem:[%s147_s28] sm:$0xff]  ;;  %v173_v2 = vld [vmem:[#allocation5] sm:$0xff]  ;;  %vm175_vm1 = vcmask 261120   ;;  %v288_v12 = vlaneseq  ;;  %s404_s15 = sshll.u32 %s646_s13, 7 }
  0x55   : > { %584 = vsyncadd (%p850_p4), [#allocation6], 4294967168  ;;  %409 = vmatprep.subr.mxu0 %v607_v0  ;;  %411 = vmatprep.mubr.msk.f32.mxu0 %vm608_vm0, %v607_v0  ;;  %v174_v3 = vmul.f32 %v173_v2, %v172_v1  ;;  %s171_s17 = scalar_lea.vmem [#allocation7], %s398_s25  ;;  %vm295_vm2 = vcmask 64512   ;;  %s786_s27 = scalar_lea.hbm %s832_s2, %s404_s15 }
  0x56   : > { %v289_v13 = vshrl.u32 %v288_v12, 7  ;;  %s311_s19 = sshll.u32 %s171_s17, 4  ;;  %s298_s29 = scalar_lea.sflag [#allocation4], %s766_s22  ;;  %s788_s19 = int_to_ptr.vmem [resolvable:$true] %s311_s19 }
  0x57   : > { %410 = vmatpush3.xpose.msk.msra.mxu0 %vm175_vm1, %v174_v3  ;;  %v249_v4 = vmul.f32 %v174_v3, %v174_v3  ;;  %s533_s13 = scalar_lea.vmem %s788_s19, 128  ;;  %s609_s30 = smov [#allocation7]  }
  0x58   : > { %v290_v14 = vsub.s32 0, %v289_v13  ;;  %p534_p6 = scmp.ne.s32.totalorder %s788_s19, %s533_s13  ;;  %s537_s3 = sshll.u32 %s609_s30, 4  ;;  %s538_s3 = int_to_ptr.vmem [resolvable:$false] %s537_s3 }
  0x59   : > { %v250_v5 = vsel %vm175_vm1, %v249_v4, 0.0  ;;  %s539_s4 = scalar_lea.vmem %s538_s3, 256  ;;  %p540_p13 = scmp.lt.s32.totalorder %s788_s19, %s538_s3 }
  0x5a   : > { %251 = vadd.xlane.f32.xlu0 %v250_v5  ;;  %412 = vmatmul.mubr.msk.f32.vlgmr.msra.gmra.mrb[0].mxu0 %vm175_vm1, %v174_v3  ;;  %p535_p9 = pnand %p534_p6, %p717_p8  ;;  %p541_p0 = scmp.lt.s32.totalorder %s539_s4, %s533_s13 }
  0x5c   : > { %p536_p12 = pneg %p535_p9  ;;  %p542_p5 = por %p541_p0, %p540_p13 }
  0x5e   : > { %p543_p10 = pnand %p542_p5, %p536_p12 }
  0xe7   : > { %v252_v6 = vpop.xlane.xlu0 %251 }
  0xe8   : > { %v253_v7 = vmax.f32 %v252_v6, 1e-16 }
  0xea   : > { %473 = vrsqrt.f32 %v253_v7 }
  0xf4   : > { %v474_v8 = vpop.eup %473 }
  0xf5   : > { %256 = vxpose.xlu0.b32.start.end [1/1] (short) (narrow) %v474_v8, 8 }
 0x12d   : > { %v245_v9 = vpop.f32.mrb[0].mxu0 }
 0x12e   : > { %v255_v10 = vmul.f32 %v474_v8, %v245_v9  ;;  %v413_v11 = vpop.f32.mrb[1].mxu0 }
 0x175   : > { %v272_v15 = vpop.trf.xlu0 }
 0x176   : > { %v291_v16 = vrot.slane %v272_v15, %v290_v14 }
 0x178   : > { %v292_v17 = vmul.f32 %v291_v16, %v255_v10 }
 0x17a   : > { %vm293_vm3 = vcmp.gt.f32.partialorder %v292_v17, 0.1 }
 0x17b   : > { %v294_v18 = vsel %vm293_vm3, %v292_v17, 9e-15 }
 0x17c   : > { %296 = vst.msk [vmem:[%s171_s17] sm:$0xff] %vm295_vm2, %v294_v18 }
 0x17d   : > { %546 = shalt.err (!%p543_p10)
}
 0x17e   : > { %s547_s5 = scalar_lea.hbm %s786_s27, 128  ;;  %s551_s18 = scalar_lea.hbm %s832_s2, 256 }
 0x17f   : > { %p548_p1 = scmp.ne.s32.totalorder %s786_s27, %s547_s5  ;;  %p552_p3 = scmp.lt.u32.totalorder %s786_s27, %s832_s2 }
 0x180   : > { %p553_p11 = scmp.lt.u32.totalorder %s551_s18, %s547_s5  ;;  %p555_p6 = scmp.lt.u32.totalorder %s547_s5, %s786_s27 }
 0x181   : > { %p549_p2 = pnand %p548_p1, %p717_p8 }
 0x182   : > { %p554_p4 = por %p553_p11, %p552_p3 }
 0x183   : > { %p550_p7 = pneg %p549_p2 }
 0x184   : > { %p556_p9 = por %p555_p6, %p554_p4 }
 0x186   : > { %p557_p12 = pnand %p556_p9, %p550_p7 }
 0x188   : > { %560 = shalt.err (!%p557_p12)
}
 0x189   : > { %420 = dma.vmem_to_hbm [thread:$0]  (%p717_p8), %s788_s19, 128, %s786_s27, %s298_s29  }
 0x18a PF: > { %s323_s25 = sand.u32 1, %s591_s9   ;;  %p851_p13 = scmp.ne.s32.totalorder %s837_s16, 0 }
 0x18b   : > { %p852_p0 = scmp.ge.s32.totalorder %s603_s12, 2  ;;  %s324_s23 = scalar_lea.sflag [#allocation4], %s323_s25 }
 0x18d   : > { %p431_p5 = pnand %p852_p0, %p851_p13 }
 0x18f   : > { %586 = dma.done.wait (!%p431_p5), %s324_s23, 128  }
 0x190   : > { %588 = vsyncadd (!%p431_p5), %s324_s23, 4294967168  ;;  %p16_p10 = scmp.ge.s32.totalorder %s673_s20, 4   ;;  %s853_s9 = smov %s595_s10 }
 0x191   : > { %s854_s10 = smov %s599_s11  ;;  %s855_s11 = smov %s709_s7 }
 0x192   : > { %s856_s12 = smov %s673_s20  ;;  %18 = sbr.rel (!%p16_p10) target bundleno = 6 (0x6), region = 77 }
 0x199   :  { %329 = vsyncpa [#allocation3], 1 }
 0x19a   :  { %331 = vsyncpa [#allocation3 + $0x1], 1 }
 0x19b   :  { %332 = vsyncpa [#allocation6], 1 }
 0x19c   :  { %333 = vsyncpa [#allocation4], 1 }
 0x19d   :  { %335 = vsyncpa [#allocation4 + $0x1], 1 }

</bundles_post_ra>
